<compile_context>
chip_gen: v5e
topology: v5e:2x2
jax: 0.10.0
libtpu: 0.0.40
codegen_flags: <defaults>
</compile_context>

<pallas_src>
import functools

import jax
import jax.numpy as jnp
from jax.experimental import pallas as pl
from jax.experimental.pallas import tpu as pltpu

BETA = 1.0                  # LearnableSigmoid default beta
LANE = 128                  # TPU lane width
ROW_TILE_DEFAULT = 2048     # packed rows per tile in the two-pass path


def _round_up(a, m):
    return (a + m - 1) // m * m


def _vmem_capacity_bytes():
    try:
        return int(pltpu.get_tpu_info().vmem_capacity_bytes)
    except Exception:
        return 64 << 20     # conservative fallback: v7x has 64 MiB per TensorCore


_VMEM_CAP = _vmem_capacity_bytes()
# Fused path keeps the whole packed x (in-block + out-block) resident in VMEM;
# require it to fit in ~45% of physical so double-buffering / weights / compiler
# scratch always fit under the raised limit.  Generation-aware by construction.
_FUSED_VMEM_BUDGET = max(8 << 20, int(0.45 * _VMEM_CAP))
_VMEM_LIMIT = max(32 << 20, min(int(0.92 * _VMEM_CAP), _VMEM_CAP - (4 << 20)))


# --------------------------- in-kernel helpers -------------------------------
def _fold_packed(s, C, k):
    """(1, k*C) packed per-channel sums -> (1, C) true per-channel sums."""
    p = s[:, :C]
    for j in range(1, k):
        p = p + s[:, j * C:(j + 1) * C]
    return p


def _repeat_lanes(g, k):
    """(1, C) -> (1, k*C) by repeating along lanes (matches the row packing)."""
    if k == 1:
        return g
    return jnp.concatenate([g] * k, axis=1)


def _gate_from_mean(p, w2_ref, b2_ref, slope_ref, *, C, beta):
    """gate = beta*sigmoid(slope*(ws(p)*p)) + wg(p)*p, with ws|wg fused into
    one (C, 2C) weight.  p: (1, C) -> gate: (1, C)."""
    pc = jnp.dot(p, w2_ref[...], preferred_element_type=jnp.float32) + b2_ref[...]
    ws = pc[:, :C]
    wg = pc[:, C:]
    return beta * jax.nn.sigmoid(slope_ref[...] * (ws * p)) + wg * p


# --------------------------------- kernels -----------------------------------
def _fused_kernel(x_ref, w2_ref, b2_ref, slope_ref, o_ref, *, C, k, inv_n, beta):
    """Whole (packed) x resident in VMEM: pool + gate + scale in one pass."""
    x = x_ref[...]                                        # (rows, k*C)
    s = jnp.sum(x, axis=0, keepdims=True)                 # (1, k*C)
    p = _fold_packed(s, C, k) * inv_n                     # (1, C) global mean
    gate = _gate_from_mean(p, w2_ref, b2_ref, slope_ref, C=C, beta=beta)
    o_ref[...] = x * _repeat_lanes(gate, k)


def _partial_sum_kernel(x_ref, ps_ref, *, valid_rows, needs_mask):
    """Pass 1: per-tile channel partial sums (parallel over tiles / both TCs)."""
    x = x_ref[...]                                        # (Rt, W)
    if needs_mask:
        tile_rows = x.shape[0]
        base = pl.program_id(0) * tile_rows
        ridx = base + jax.lax.broadcasted_iota(jnp.int32, (tile_rows, 1), 0)
        x = jnp.where(ridx < valid_rows, x, 0.0)          # kill garbage rows
    ps_ref[...] = jnp.sum(x, axis=0, keepdims=True).reshape(1, 1, -1)


def _gate_kernel(ps_ref, w2_ref, b2_ref, slope_ref, gate_ref, *, C, k, inv_n, beta):
    """Tiny single-step kernel: reduce partial sums -> mean -> packed gate."""
    s = jnp.sum(ps_ref[...], axis=0)                      # (1, W)
    p = _fold_packed(s, C, k) * inv_n                     # (1, C)
    gate = _gate_from_mean(p, w2_ref, b2_ref, slope_ref, C=C, beta=beta)
    gate_ref[...] = _repeat_lanes(gate, k)


def _scale_kernel(x_ref, gate_ref, o_ref):
    """Pass 2: lane-dense broadcast multiply (OOB stores on the partial last
    tile are dropped by Pallas)."""
    o_ref[...] = x_ref[...] * gate_ref[...]


# ------------------------------ pallas_call glue ------------------------------
def _weight_specs(C):
    z2 = lambda i: (0, 0)
    return [
        pl.BlockSpec((C, 2 * C), z2),    # fused ws|wg weight, (in, 2*out)
        pl.BlockSpec((1, 2 * C), z2),    # fused bias
        pl.BlockSpec((1, C), z2),        # LearnableSigmoid slope
    ]


def _fused_call(xp, w2, b2, slope, *, C, k, inv_n):
    rows, W = xp.shape
    R = rows * k
    kernel = functools.partial(_fused_kernel, C=C, k=k, inv_n=inv_n, beta=BETA)
    ce = pl.CostEstimate(
        flops=int(3 * R * C + 4 * C * C + 8 * C),
        transcendentals=int(C),
        bytes_accessed=int(4 * (2 * rows * W + 2 * C * C + 4 * C)))
    return pl.pallas_call(
        kernel,
        out_shape=jax.ShapeDtypeStruct((rows, W), jnp.float32),
        grid=(1,),
        in_specs=[pl.BlockSpec((rows, W), lambda i: (0, 0))] + _weight_specs(C),
        out_specs=pl.BlockSpec((rows, W), lambda i: (0, 0)),
        compiler_params=pltpu.CompilerParams(
            dimension_semantics=("arbitrary",),
            vmem_limit_bytes=_VMEM_LIMIT),
        cost_estimate=ce,
    )(xp, w2, b2, slope)


def _two_pass_call(xp, w2, b2, slope, *, C, k, inv_n, row_tile):
    rows, W = xp.shape

    # Row tile: multiple of 8, no larger than needed, and streamed buffers
    # (2 arrays x 2 pipeline buffers) must fit the VMEM budget.
    max_rt = max(8, (_FUSED_VMEM_BUDGET // (16 * W)) // 8 * 8)
    Rt = _round_up(max(8, min(int(row_tile), rows)), 8)
    Rt = min(Rt, max_rt)
    n = pl.cdiv(rows, Rt)
    needs_mask = (rows % Rt) != 0

    # ---- pass 1: per-tile channel partial sums (parallel over tiles) --------
    psums = pl.pallas_call(
        functools.partial(_partial_sum_kernel, valid_rows=rows,
                          needs_mask=needs_mask),
        out_shape=jax.ShapeDtypeStruct((n, 1, W), jnp.float32),
        grid=(n,),
        in_specs=[pl.BlockSpec((Rt, W), lambda i: (i, 0))],
        out_specs=pl.BlockSpec((1, 1, W), lambda i: (i, 0, 0)),
        compiler_params=pltpu.CompilerParams(
            dimension_semantics=("parallel",),
            vmem_limit_bytes=_VMEM_LIMIT),
        cost_estimate=pl.CostEstimate(
            flops=int(rows * W), transcendentals=0,
            bytes_accessed=int(4 * (rows * W + n * W))),
    )(xp)

    # ---- gate: tiny single-step kernel ---------------------------------------
    gate = pl.pallas_call(
        functools.partial(_gate_kernel, C=C, k=k, inv_n=inv_n, beta=BETA),
        out_shape=jax.ShapeDtypeStruct((1, W), jnp.float32),
        grid=(1,),
        in_specs=[pl.BlockSpec((n, 1, W), lambda i: (0, 0, 0))] + _weight_specs(C),
        out_specs=pl.BlockSpec((1, W), lambda i: (0, 0)),
        compiler_params=pltpu.CompilerParams(
            dimension_semantics=("arbitrary",),
            vmem_limit_bytes=_VMEM_LIMIT),
        cost_estimate=pl.CostEstimate(
            flops=int(n * W + 4 * C * C + 8 * C), transcendentals=int(C),
            bytes_accessed=int(4 * (n * W + 2 * C * C + 4 * C))),
    )(psums, w2, b2, slope)

    # ---- pass 2: broadcast multiply (parallel over row tiles) ----------------
    out = pl.pallas_call(
        _scale_kernel,
        out_shape=jax.ShapeDtypeStruct((rows, W), jnp.float32),
        grid=(n,),
        in_specs=[pl.BlockSpec((Rt, W), lambda i: (i, 0)),
                  pl.BlockSpec((1, W), lambda i: (0, 0))],
        out_specs=pl.BlockSpec((Rt, W), lambda i: (i, 0)),
        compiler_params=pltpu.CompilerParams(
            dimension_semantics=("parallel",),
            vmem_limit_bytes=_VMEM_LIMIT),
        cost_estimate=pl.CostEstimate(
            flops=int(rows * W), transcendentals=0,
            bytes_accessed=int(4 * (2 * rows * W + W))),
    )(xp, gate)
    return out


def _pack_factor(C, R):
    """Largest k with k*C == 128 lanes and k | R (no host-side padding)."""
    if C < LANE and LANE % C == 0:
        k = LANE // C                    # power of two (128 = 2**7)
        while k > 1 and R % k != 0:
            k //= 2
        return k
    return 1


def globle_c_forward(x, params, force_two_pass=False, row_tile=ROW_TILE_DEFAULT):
    """GlobleCModule forward. x: (F, T, C) float32 -> (F, T, C) float32."""
    F, T, C = x.shape
    R = F * T
    k = _pack_factor(C, R)               # lane packing factor (no pad needed)
    rows = R // k
    W = k * C
    xp = x.reshape(rows, W)              # contiguous reshape: free, no HBM copy
    inv_n = 1.0 / R

    # Fuse the two Linear layers into one (C, 2C) matmul (tiny host-side concat).
    w2 = jnp.concatenate([params["wws"], params["wwg"]], axis=1)   # (C, 2C)
    b2 = jnp.concatenate([params["bws"], params["bwg"]], axis=1)   # (1, 2C)
    slope = params["slope"]

    x_bytes = rows * W * 4
    weight_bytes = (2 * C * C + 3 * C) * 4
    fused_ok = (2 * x_bytes + 2 * weight_bytes + (1 << 20)) <= _FUSED_VMEM_BUDGET

    if fused_ok and not force_two_pass:
        op = _fused_call(xp, w2, b2, slope, C=C, k=k, inv_n=inv_n)
    else:
        op = _two_pass_call(xp, w2, b2, slope, C=C, k=k, inv_n=inv_n,
                            row_tile=row_tile)
    return op.reshape(F, T, C)           # exact element count: free reshape


# --------------------------- params & pure-JAX reference ----------------------
def init_globle_c_params(key, channels):
    """Synthetic parameters (nn.Linear-style init). Linear weights are stored
    pre-transposed as (in, out) so kernels compute p @ W + b."""
    k1, k2, k3, k4 = jax.random.split(key, 4)
    bound = channels ** -0.5
    u = lambda kk, shape: jax.random.uniform(kk, shape, jnp.float32, -bound, bound)
    return dict(
        wws=u(k1, (channels, channels)),
        bws=u(k2, (1, channels)),
        wwg=u(k3, (channels, channels)),
        bwg=u(k4, (1, channels)),
        slope=jnp.ones((1, channels), jnp.float32),   # LearnableSigmoid init
    )


def globle_c_reference(x, params):
    """Pure-JAX reference of the PyTorch forward (correctness oracle)."""
    F, T, C = x.shape
    p = jnp.mean(x.reshape(F * T, C), axis=0, keepdims=True)            # (1, C)
    ws = p @ params["wws"] + params["bws"]
    wg = p @ params["wwg"] + params["bwg"]
    gate = BETA * jax.nn.sigmoid(params["slope"] * (ws * p)) + wg * p   # (1, C)
    return x * gate.reshape(1, 1, C)


# ------------------------------------ main ------------------------------------
if __name__ == "__main__":
    key = jax.random.PRNGKey(0)
    kx1, kx2, kx3, kp = jax.random.split(key, 4)

    C = 64                                   # channels of GlobleCModule
    params = init_globle_c_params(kp, C)

    fwd = jax.jit(globle_c_forward, static_argnames=("force_two_pass", "row_tile"))

    def _check(out, ref):
        assert out.shape == ref.shape, out.shape
        assert bool(jnp.all(jnp.isfinite(out)))
        assert bool(jnp.allclose(out, ref, rtol=1e-5, atol=1e-5)), \
            float(jnp.max(jnp.abs(out - ref)))

    # Small (f, t, c) input -> single fused kernel (one HBM read + write of x).
    x1 = jax.random.normal(kx1, (16, 8, C), jnp.float32)
    out1 = jax.block_until_ready(fwd(x1, params))
    _check(out1, globle_c_reference(x1, params))

    # Ragged input forced through the tiled path with a non-multiple-of-8 tile:
    # exercises tile rounding, the parallel partial-sum pass with last-tile
    # masking, the tiny gate kernel, and OOB-store dropping in the scale pass.
    x2 = jax.random.normal(kx2, (30, 30, C), jnp.float32)
    out2 = jax.block_until_ready(fwd(x2, params, force_two_pass=True, row_tile=100))
    _check(out2, globle_c_reference(x2, params))

    # Odd F*T -> lane-packing falls back to k=1 (sub-128-lane but pad-free).
    x3 = jax.random.normal(kx3, (15, 7, C), jnp.float32)
    out3 = jax.block_until_ready(fwd(x3, params))
    _check(out3, globle_c_reference(x3, params))

    print("KERNEL_OK")
</pallas_src>

<mosaic_0001>
module attributes {stable_mosaic.version = 11 : i64} {
  func.func @_fused_kernel(%arg0: i32, %arg1: memref<64x128xf32, #tpu.memory_space<vmem>>, %arg2: memref<64x128xf32, #tpu.memory_space<vmem>>, %arg3: memref<1x128xf32, #tpu.memory_space<vmem>>, %arg4: memref<1x64xf32, #tpu.memory_space<vmem>>, %arg5: memref<64x128xf32, #tpu.memory_space<vmem>>) attributes {dimension_semantics = [#tpu.dimension_semantics<arbitrary>], iteration_bounds = array<i64: 1>, scalar_prefetch = 0 : i64, scratch_operands = 0 : i64, tpu.core_type = #tpu.core_type<tc>, window_params = [{pipeline_mode = #tpu.pipeline_mode<synchronous>, transform_indices = @transform_0, window_bounds = array<i64: 64, 128>}, {pipeline_mode = #tpu.pipeline_mode<synchronous>, transform_indices = @transform_1, window_bounds = array<i64: 64, 128>}, {pipeline_mode = #tpu.pipeline_mode<synchronous>, transform_indices = @transform_2, window_bounds = array<i64: 1, 128>}, {pipeline_mode = #tpu.pipeline_mode<synchronous>, transform_indices = @transform_3, window_bounds = array<i64: 1, 64>}, {pipeline_mode = #tpu.pipeline_mode<synchronous>, transform_indices = @transform_4, window_bounds = array<i64: 64, 128>}]} {
    %c0 = arith.constant 0 : index
    %c0_0 = arith.constant 0 : index
    %0 = vector.load %arg1[%c0, %c0_0] : memref<64x128xf32, #tpu.memory_space<vmem>>, vector<64x128xf32>
    %cst = arith.constant dense<0.000000e+00> : vector<128xf32>
    %1 = vector.multi_reduction <add>, %0, %cst [0] : vector<64x128xf32> to vector<128xf32>
    %2 = vector.shape_cast %1 : vector<128xf32> to vector<1x128xf32>
    %3 = vector.extract_strided_slice %2 {offsets = [0, 0], sizes = [1, 64], strides = [1, 1]} : vector<1x128xf32> to vector<1x64xf32>
    %4 = vector.extract_strided_slice %2 {offsets = [0, 64], sizes = [1, 64], strides = [1, 1]} : vector<1x128xf32> to vector<1x64xf32>
    %5 = arith.addf %3, %4 : vector<1x64xf32>
    %cst_1 = arith.constant 7.812500e-03 : f32
    %6 = vector.broadcast %cst_1 : f32 to vector<1x64xf32>
    %7 = arith.mulf %5, %6 : vector<1x64xf32>
    %c0_2 = arith.constant 0 : index
    %c0_3 = arith.constant 0 : index
    %8 = vector.load %arg2[%c0_2, %c0_3] : memref<64x128xf32, #tpu.memory_space<vmem>>, vector<64x128xf32>
    %cst_4 = arith.constant dense<0.000000e+00> : vector<1x128xf32>
    %9 = tpu.matmul %7, %8, %cst_4 {dimension_numbers = #tpu.dot_dimension_numbers<[1], [0], [0], [1], [0, 0, 1, 1], [], []>} : vector<1x64xf32>, vector<64x128xf32>, vector<1x128xf32> -> vector<1x128xf32>
    %c0_5 = arith.constant 0 : index
    %c0_6 = arith.constant 0 : index
    %10 = vector.load %arg3[%c0_5, %c0_6] : memref<1x128xf32, #tpu.memory_space<vmem>>, vector<1x128xf32>
    %11 = arith.addf %9, %10 : vector<1x128xf32>
    %12 = vector.extract_strided_slice %11 {offsets = [0, 0], sizes = [1, 64], strides = [1, 1]} : vector<1x128xf32> to vector<1x64xf32>
    %13 = vector.extract_strided_slice %11 {offsets = [0, 64], sizes = [1, 64], strides = [1, 1]} : vector<1x128xf32> to vector<1x64xf32>
    %c0_7 = arith.constant 0 : index
    %c0_8 = arith.constant 0 : index
    %14 = vector.load %arg4[%c0_7, %c0_8] : memref<1x64xf32, #tpu.memory_space<vmem>>, vector<1x64xf32>
    %15 = arith.mulf %12, %7 : vector<1x64xf32>
    %16 = arith.mulf %14, %15 : vector<1x64xf32>
    %17 = arith.negf %16 : vector<1x64xf32>
    %18 = math.exp %17 : vector<1x64xf32>
    %cst_9 = arith.constant 1.000000e+00 : f32
    %19 = vector.broadcast %cst_9 : f32 to vector<1x64xf32>
    %20 = arith.addf %19, %18 : vector<1x64xf32>
    %21 = arith.divf %19, %20 : vector<1x64xf32>
    %cst_10 = arith.constant 1.000000e+00 : f32
    %22 = vector.broadcast %cst_10 : f32 to vector<1x64xf32>
    %23 = arith.mulf %22, %21 : vector<1x64xf32>
    %24 = arith.mulf %13, %7 : vector<1x64xf32>
    %25 = arith.addf %23, %24 : vector<1x64xf32>
    %26 = tpu.concatenate %25, %25 in 1 : vector<1x64xf32>, vector<1x64xf32> -> vector<1x128xf32>
    %27 = vector.broadcast %26 : vector<1x128xf32> to vector<64x128xf32>
    %28 = arith.mulf %0, %27 : vector<64x128xf32>
    %c0_11 = arith.constant 0 : index
    %c0_12 = arith.constant 0 : index
    %29 = vector.load %arg5[%c0_11, %c0_12] : memref<64x128xf32, #tpu.memory_space<vmem>>, vector<64x128xf32>
    tpu.vector_store %arg5[%c0_11, %c0_12], %28 {strides = array<i32>} : memref<64x128xf32, #tpu.memory_space<vmem>>, vector<64x128xf32>,
    return
  }
  func.func @transform_0(%arg0: i32) -> (i32, i32) {
    %c0_i32 = arith.constant 0 : i32
    %c0_i32_0 = arith.constant 0 : i32
    %c0_i32_1 = arith.constant 0 : i32
    return %c0_i32, %c0_i32_0 : i32, i32
  }
  func.func @transform_1(%arg0: i32) -> (i32, i32) {
    %c0_i32 = arith.constant 0 : i32
    %c0_i32_0 = arith.constant 0 : i32
    %c0_i32_1 = arith.constant 0 : i32
    return %c0_i32, %c0_i32_0 : i32, i32
  }
  func.func @transform_2(%arg0: i32) -> (i32, i32) {
    %c0_i32 = arith.constant 0 : i32
    %c0_i32_0 = arith.constant 0 : i32
    %c0_i32_1 = arith.constant 0 : i32
    return %c0_i32, %c0_i32_0 : i32, i32
  }
  func.func @transform_3(%arg0: i32) -> (i32, i32) {
    %c0_i32 = arith.constant 0 : i32
    %c0_i32_0 = arith.constant 0 : i32
    %c0_i32_1 = arith.constant 0 : i32
    return %c0_i32, %c0_i32_0 : i32, i32
  }
  func.func @transform_4(%arg0: i32) -> (i32, i32) {
    %c0_i32 = arith.constant 0 : i32
    %c0_i32_0 = arith.constant 0 : i32
    %c0_i32_1 = arith.constant 0 : i32
    return %c0_i32, %c0_i32_0 : i32, i32
  }
}

</mosaic_0001>

<bundles_post_ra>
// kernel: globle_c_forward.1
= control target key start
LH: loop header
LB: loop body
LE: loop exit
PB: predicated region body
PF: predicated region fallthrough
CT: control target
= control target key end

     0   :  { %s142_s17 = smov 64   ;;  %vm53_vm0 = vcmask 523264   ;;  %s284_s0 = inlined_call_operand.vmem [shape: f32[64,128], index: 0, kind: input, shape index: {}]   ;;  %s285_s1 = inlined_call_operand.vmem [shape: f32[64,128], index: 1, kind: input, shape index: {}]   ;;  %s286_s2 = inlined_call_operand.vmem [shape: f32[1,128], index: 2, kind: input, shape index: {}]   ;;  %s287_s3 = inlined_call_operand.vmem [shape: f32[1,64], index: 3, kind: input, shape index: {}]   ;;  %s288_s4 = inlined_call_operand.vmem [shape: f32[64,128], index: 4, kind: output, shape index: {}]  }
   0x1   :  { %v171_v0 = vld [vmem:[%s284_s0] sm:$0xff]  ;;  %v176_v1 = vld [vmem:[%s284_s0 + $0x8] sm:$0xff]  ;;  %v181_v2 = vld [vmem:[%s284_s0 + $0x10] sm:$0xff] }
   0x2   :  { %v25_v3 = vadd.f32 %v176_v1, %v171_v0  ;;  %v188_v4 = vld [vmem:[%s284_s0 + $0x18] sm:$0xff]  ;;  %v50_v7 = vld [vmem:[%s285_s1 + $0x30] sm:$0xff]  ;;  %v200_v8 = vld [vmem:[%s284_s0 + $0x20] sm:$0xff] }
   0x3   :  { %v51_v5 = vld [vmem:[%s285_s1 + $0x38] sm:$0xff]  ;;  %v49_v9 = vld [vmem:[%s285_s1 + $0x28] sm:$0xff]  ;;  %v48_v12 = vld [vmem:[%s285_s1 + $0x20] sm:$0xff] }
   0x4   :  { %v26_v6 = vadd.f32 %v25_v3, %v181_v2  ;;  %65 = vmatpush.msra.mxu0 %v51_v5  ;;  %v209_v11 = vld [vmem:[%s284_s0 + $0x28] sm:$0xff]  ;;  %v218_v14 = vld [vmem:[%s284_s0 + $0x30] sm:$0xff]  ;;  %v47_v15 = vld [vmem:[%s285_s1 + $0x18] sm:$0xff] }
   0x5   :  { %v227_v17 = vld [vmem:[%s284_s0 + $0x38] sm:$0xff]  ;;  %v46_v18 = vld [vmem:[%s285_s1 + $0x10] sm:$0xff]  ;;  %v45_v27 = vld [vmem:[%s285_s1 + $0x8] sm:$0xff] }
   0x6   :  { %v27_v10 = vadd.f32 %v26_v6, %v188_v4  ;;  %66 = vmatpush.msra.mxu0 %v50_v7  ;;  %v44_v28 = vld [vmem:[%s285_s1] sm:$0xff] }
   0x7   :  { %v52_v32 = vld [vmem:[%s286_s2] sm:$0x1] }
   0x8   :  { %v28_v13 = vadd.f32 %v27_v10, %v200_v8  ;;  %67 = vmatpush.msra.mxu0 %v49_v9  ;;  %v77_v38 = vld [vmem:[%s287_s3] sm:$0x1] }
   0xa   :  { %v29_v16 = vadd.f32 %v28_v13, %v209_v11  ;;  %68 = vmatpush.msra.mxu0 %v48_v12 }
   0xc   :  { %v30_v19 = vadd.f32 %v29_v16, %v218_v14  ;;  %69 = vmatpush.msra.mxu0 %v47_v15 }
   0xe   :  { %v31_v20 = vadd.f32 %v30_v19, %v227_v17  ;;  %70 = vmatpush.msra.mxu0 %v46_v18 }
  0x10   :  { %v32_v21 = vrot.slane %v31_v20, 4  ;;  %71 = vmatpush.msra.mxu0 %v45_v27 }
  0x12   :  { %v33_v22 = vadd.f32 %v32_v21, %v31_v20  ;;  %72 = vmatpush.msra.mxu0 %v44_v28 }
  0x14   :  { %v34_v23 = vrot.slane %v33_v22, 2 }
  0x16   :  { %v35_v24 = vadd.f32 %v34_v23, %v33_v22 }
  0x18   :  { %v36_v25 = vrot.slane %v35_v24, 1 }
  0x1a   :  { %v37_v26 = vadd.f32 %v36_v25, %v35_v24 }
  0x1c   :  { %39 = vrot.lane.b32.xlu0 %v37_v26, %s142_s17 }
  0x8e   :  { %v40_v29 = vpop.permute.xlu0 %39 }
  0x8f   :  { %v42_v30 = vadd.f32 %v40_v29, %v37_v26 }
  0x91   :  { %v43_v31 = vmul.f32 0.0078125, %v42_v30 }
  0x93   :  { %99 = vrot.lane.b32.xlu0 %v43_v31, %s142_s17  ;;  %135 = vmatmul.msk.f32.vlgmr.msra.gmra.mxu0 %vm53_vm0, %v43_v31 }
 0x105   :  { %v100_v35 = vpop.permute.xlu0 %99 }
 0x110   :  { %v74_v33 = vpop.f32.mrf.mxu0 }
 0x111   :  { %v75_v34 = vadd.f32 %v74_v33, %v52_v32 }
 0x113   :  { %v102_v36 = vmul.f32 %v100_v35, %v75_v34  ;;  %v78_v37 = vmul.f32 %v75_v34, %v43_v31 }
 0x115   :  { %104 = vrot.lane.b32.xlu1 %v102_v36, %s142_s17  ;;  %v79_v39 = vmul.f32 %v78_v37, %v77_v38 }
 0x117   :  { %v136_v40 = vmul.f32 -1.442695, %v79_v39 }
 0x119   :  { %138 = vpow2.f32 %v136_v40 }
 0x11f   :  { %v139_v41 = vpop.eup %138 }
 0x120   :  { %v83_v42 = vadd.f32 1.0, %v139_v41 }
 0x122   :  { %140 = vrcp.f32 %v83_v42  ;;  %v95_v48 = vand.u32 2147483648, %v83_v42  ;;  %vm89_vm2 = vweird.f32 %v83_v42  ;;  %v93_v49 = vand.u32 2147483647, %v83_v42 }
 0x124   :  { %v96_v51 = vor.u32 1.1754944e-38, %v95_v48  ;;  %vm94_vm4 = vcmp.eq.f32.partialorder %v93_v49, 8.507059e+37 }
 0x128   :  { %v141_v43 = vpop.eup %140 }
 0x129   :  { %v85_v44 = vmul.f32 %v141_v43, %v83_v42  ;;  %vm90_vm1 = vweird.f32 %v141_v43 }
 0x12a   :  { %vm91_vm3 = vmor %vm89_vm2, %vm90_vm1 }
 0x12b   :  { %v86_v45 = vsub.f32 1.0, %v85_v44 }
 0x12d   :  { %v87_v46 = vmul.f32 %v141_v43, %v86_v45 }
 0x12f   :  { %v88_v47 = vadd.f32 %v141_v43, %v87_v46 }
 0x131   :  { %v92_v50 = vsel %vm91_vm3, %v141_v43, %v88_v47 }
 0x132   :  { %v97_v53 = vsel %vm94_vm4, %v96_v51, %v92_v50 }
 0x187   :  { %v105_v52 = vpop.permute.xlu1 %104 }
 0x188   :  { %v107_v54 = vadd.f32 %v105_v52, %v97_v53 }
 0x18a   :  { %v109_v55 = vperm.slane %v107_v54, 0 }
 0x18c   :  { %110 = vrot.lane.b32.xlu1 %v109_v55, %s142_s17 }
 0x1fe   :  { %v111_v56 = vpop.permute.xlu1 %110 }
 0x1ff   :  { %v113_v57 = vsel %vm53_vm0, %v107_v54, %v111_v56 }
 0x200   :  { %v114_v58 = vperm.slane %v113_v57, 0 }
 0x202   :  { %v115_v59 = vmul.f32 %v114_v58, %v171_v0  ;;  %v116_v60 = vmul.f32 %v114_v58, %v176_v1  ;;  %v117_v61 = vmul.f32 %v114_v58, %v181_v2  ;;  %v118_v62 = vmul.f32 %v114_v58, %v188_v4 }
 0x203   :  { %v119_v63 = vmul.f32 %v114_v58, %v200_v8  ;;  %v120_v3 = vmul.f32 %v114_v58, %v209_v11  ;;  %v121_v0 = vmul.f32 %v114_v58, %v218_v14  ;;  %v122_v1 = vmul.f32 %v114_v58, %v227_v17 }
 0x204   :  { %123 = vst [vmem:[%s288_s4] sm:$0xff] %v115_v59 }
 0x205   :  { %124 = vst [vmem:[%s288_s4 + $0x8] sm:$0xff] %v116_v60 }
 0x206   :  { %125 = vst [vmem:[%s288_s4 + $0x10] sm:$0xff] %v117_v61 }
 0x207   :  { %126 = vst [vmem:[%s288_s4 + $0x18] sm:$0xff] %v118_v62 }
 0x208   :  { %127 = vst [vmem:[%s288_s4 + $0x20] sm:$0xff] %v119_v63 }
 0x209   :  { %128 = vst [vmem:[%s288_s4 + $0x28] sm:$0xff] %v120_v3 }
 0x20a   :  { %129 = vst [vmem:[%s288_s4 + $0x30] sm:$0xff] %v121_v0 }
 0x20b   :  { %130 = vst [vmem:[%s288_s4 + $0x38] sm:$0xff] %v122_v1 }

</bundles_post_ra>
